<compile_context>
chip_gen: v7x
topology: tpu7x:2x2x1
jax: 0.10.0
libtpu: 0.0.40
codegen_flags: <defaults>
</compile_context>

<pallas_src>
import functools

import jax
import jax.numpy as jnp
from jax.experimental import pallas as pl
from jax.experimental.pallas import tpu as pltpu


IN_FEATURES = 10
OUT_FEATURES = 2
LANE = 128
DEFAULT_TILE = 512


def composed_affine_kernel(x_ref, w_ref, b_ref, o_ref):
    """y = W_eff^T @ x + b_eff, computed on the VPU/XLU (no MXU).

    x_ref: (10, T) VMEM  -- batch*seq mapped to lanes
    w_ref: (10, 2) VMEM  -- composed weight (resident across the grid)
    b_ref: (2,)    SMEM  -- composed bias (cheap scalar reads)
    o_ref: (2, T)  VMEM  -- lane-dense output
    """
    x = x_ref[...]                                  # (10, T)
    w = w_ref[...]                                  # (10, 2)
    rows = []
    for j in range(OUT_FEATURES):                   # unrolled at trace time (2)
        # lane-broadcast the weight column, multiply (VPU), sublane-reduce (XLU)
        yj = jnp.sum(x * w[:, j:j + 1], axis=0, keepdims=True) + b_ref[j]
        rows.append(yj)
    o_ref[...] = jnp.concatenate(rows, axis=0).astype(o_ref.dtype)


def init_linear(key, out_features, in_features):
    """Deterministic init mimicking torch.nn.Linear default (uniform +-1/sqrt(fan_in))."""
    kw, kb = jax.random.split(key)
    bound = 1.0 / jnp.sqrt(jnp.float32(in_features))
    w = jax.random.uniform(kw, (out_features, in_features), jnp.float32, -bound, bound)
    b = jax.random.uniform(kb, (out_features,), jnp.float32, -bound, bound)
    return w, b


def compose_params(params):
    """Fold the 4 affine layers into one (10, 2) weight and (2,) bias."""
    (w01, b01), (w02, b02), (w1, b1), (w2, b2) = params
    a01 = w01.T            # (10, 5)  fc0.fc1
    a02 = w02.T            # (5, 2)   fc0.fc2
    a1 = w1[:, :2].T       # (2, 5)   fc1 (first 2 input columns, see TODO(synk))
    a2 = w2.T              # (5, 2)   fc2
    w_eff = a01 @ a02 @ a1 @ a2                              # (10, 2)
    b_eff = ((b01 @ a02 + b02) @ a1 + b1) @ a2 + b2          # (2,)
    return w_eff, b_eff


@functools.partial(jax.jit, static_argnames=("tile_n",))
def complex_model_forward(x, params, tile_n=DEFAULT_TILE):
    """x: (B, S, 10) float32 -> (B, S, 2) float32."""
    B, S, F = x.shape
    assert F == IN_FEATURES, "fc0.fc1 expects 10 input features"

    w_eff, b_eff = compose_params(params)

    # Batch*seq on lanes; pad N up to a multiple of the tile.
    N = B * S
    xt = x.reshape(N, F).T                                   # (10, N)

    tile = min(tile_n, max(LANE, pl.cdiv(N, LANE) * LANE))
    n_pad = pl.cdiv(N, tile) * tile
    if n_pad != N:
        xt = jnp.pad(xt, ((0, 0), (0, n_pad - N)))

    out = pl.pallas_call(
        composed_affine_kernel,
        out_shape=jax.ShapeDtypeStruct((OUT_FEATURES, n_pad), jnp.float32),
        grid=(n_pad // tile,),
        in_specs=[
            pl.BlockSpec((F, tile), lambda i: (0, i)),              # x tile
            pl.BlockSpec((F, OUT_FEATURES), lambda i: (0, 0)),      # W_eff (resident)
            pl.BlockSpec(memory_space=pltpu.MemorySpace.SMEM),      # b_eff scalars
        ],
        out_specs=pl.BlockSpec((OUT_FEATURES, tile), lambda i: (0, i)),
        compiler_params=pltpu.CompilerParams(
            dimension_semantics=("parallel",)),                     # megacore on v7x
    )(xt, w_eff, b_eff)

    return out[:, :N].T.reshape(B, S, OUT_FEATURES)


def reference_forward(x, params):
    """Pure-JAX layer-by-layer reference with identical semantics."""
    (w01, b01), (w02, b02), (w1, b1), (w2, b2) = params
    h = x @ w01.T + b01
    h = h @ w02.T + b02
    h = h @ w1[:, :2].T + b1          # see TODO(synk) above
    h = h @ w2.T + b2
    return h


if __name__ == "__main__":
    key = jax.random.PRNGKey(0)
    k_x, k_x2, k0, k1, k2, k3 = jax.random.split(key, 6)

    # Parameter shapes exactly as declared in __init__:
    params = (
        init_linear(k0, 5, 10),   # fc0.fc1: Linear(10, 5)
        init_linear(k1, 2, 5),    # fc0.fc2: Linear(5, 2)
        init_linear(k2, 5, 10),   # fc1:     Linear(10, 5)
        init_linear(k3, 2, 5),    # fc2:     Linear(5, 2)
    )

    # Small input consistent with fc0's Linear(10, 5): (batch=2, seq=3, dim=10).
    x = jax.random.normal(k_x, (2, 3, 10), jnp.float32)
    out = jax.block_until_ready(complex_model_forward(x, params))
    ref = reference_forward(x, params)
    assert out.shape == (2, 3, 2)
    assert jnp.allclose(out, ref, atol=1e-5, rtol=1e-5)

    # Second shape exercises the multi-tile grid + lane-padding path
    # (N = 1200 -> 3 tiles of 512 lanes, padded to 1536).
    x2 = jax.random.normal(k_x2, (4, 300, 10), jnp.float32)
    out2 = jax.block_until_ready(complex_model_forward(x2, params))
    ref2 = reference_forward(x2, params)
    assert out2.shape == (4, 300, 2)
    assert jnp.allclose(out2, ref2, atol=1e-5, rtol=1e-5)

    print("KERNEL_OK")
</pallas_src>

<mosaic_0001>
module attributes {stable_mosaic.version = 11 : i64} {
  func.func @composed_affine_kernel(%arg0: i32, %arg1: memref<10x128xf32, #tpu.memory_space<vmem>>, %arg2: memref<10x2xf32, #tpu.memory_space<vmem>>, %arg3: memref<2xf32, #tpu.memory_space<smem>>, %arg4: memref<2x128xf32, #tpu.memory_space<vmem>>) attributes {dimension_semantics = [#tpu.dimension_semantics<parallel>], iteration_bounds = array<i64: 1>, scalar_prefetch = 0 : i64, scratch_operands = 0 : i64, tpu.core_type = #tpu.core_type<tc>, window_params = [{transform_indices = @transform_0, window_bounds = array<i64: 10, 128>}, {pipeline_mode = #tpu.pipeline_mode<synchronous>, transform_indices = @transform_1, window_bounds = array<i64: 10, 2>}, {transform_indices = @transform_2, window_bounds = array<i64: 2>}, {transform_indices = @transform_3, window_bounds = array<i64: 2, 128>}]} {
    %c0 = arith.constant 0 : index
    %c0_0 = arith.constant 0 : index
    %0 = vector.load %arg1[%c0, %c0_0] : memref<10x128xf32, #tpu.memory_space<vmem>>, vector<10x128xf32>
    %c0_1 = arith.constant 0 : index
    %c0_2 = arith.constant 0 : index
    %1 = vector.load %arg2[%c0_1, %c0_2] : memref<10x2xf32, #tpu.memory_space<vmem>>, vector<10x2xf32>
    %2 = vector.extract_strided_slice %1 {offsets = [0, 0], sizes = [10, 1], strides = [1, 1]} : vector<10x2xf32> to vector<10x1xf32>
    %3 = vector.broadcast %2 : vector<10x1xf32> to vector<10x128xf32>
    %4 = arith.mulf %0, %3 : vector<10x128xf32>
    %cst = arith.constant dense<0.000000e+00> : vector<128xf32>
    %5 = vector.multi_reduction <add>, %4, %cst [0] : vector<10x128xf32> to vector<128xf32>
    %6 = vector.shape_cast %5 : vector<128xf32> to vector<1x128xf32>
    %c0_3 = arith.constant 0 : index
    %7 = memref.load %arg3[%c0_3] : memref<2xf32, #tpu.memory_space<smem>>
    %8 = vector.broadcast %7 : f32 to vector<1x128xf32>
    %9 = arith.addf %6, %8 : vector<1x128xf32>
    %10 = vector.extract_strided_slice %1 {offsets = [0, 1], sizes = [10, 1], strides = [1, 1]} : vector<10x2xf32> to vector<10x1xf32>
    %11 = vector.broadcast %10 : vector<10x1xf32> to vector<10x128xf32>
    %12 = arith.mulf %0, %11 : vector<10x128xf32>
    %cst_4 = arith.constant dense<0.000000e+00> : vector<128xf32>
    %13 = vector.multi_reduction <add>, %12, %cst_4 [0] : vector<10x128xf32> to vector<128xf32>
    %14 = vector.shape_cast %13 : vector<128xf32> to vector<1x128xf32>
    %c1 = arith.constant 1 : index
    %15 = memref.load %arg3[%c1] : memref<2xf32, #tpu.memory_space<smem>>
    %16 = vector.broadcast %15 : f32 to vector<1x128xf32>
    %17 = arith.addf %14, %16 : vector<1x128xf32>
    %18 = tpu.concatenate %9, %17 in 0 : vector<1x128xf32>, vector<1x128xf32> -> vector<2x128xf32>
    %c0_5 = arith.constant 0 : index
    %c0_6 = arith.constant 0 : index
    %19 = vector.load %arg4[%c0_5, %c0_6] : memref<2x128xf32, #tpu.memory_space<vmem>>, vector<2x128xf32>
    tpu.vector_store %arg4[%c0_5, %c0_6], %18 {strides = array<i32>} : memref<2x128xf32, #tpu.memory_space<vmem>>, vector<2x128xf32>,
    return
  }
  func.func @transform_0(%arg0: i32) -> (i32, i32) {
    %c0_i32 = arith.constant 0 : i32
    %c0_i32_0 = arith.constant 0 : i32
    return %c0_i32, %arg0 : i32, i32
  }
  func.func @transform_1(%arg0: i32) -> (i32, i32) {
    %c0_i32 = arith.constant 0 : i32
    %c0_i32_0 = arith.constant 0 : i32
    %c0_i32_1 = arith.constant 0 : i32
    return %c0_i32, %c0_i32_0 : i32, i32
  }
  func.func @transform_2(%arg0: i32) -> i32 {
    %c0_i32 = arith.constant 0 : i32
    %c0_i32_0 = arith.constant 0 : i32
    return %c0_i32 : i32
  }
  func.func @transform_3(%arg0: i32) -> (i32, i32) {
    %c0_i32 = arith.constant 0 : i32
    %c0_i32_0 = arith.constant 0 : i32
    return %c0_i32, %arg0 : i32, i32
  }
}

</mosaic_0001>

<bundles_post_ra>
// kernel: complex_model_forward.1
= control target key start
LH: loop header
LB: loop body
LE: loop exit
PB: predicated region body
PF: predicated region fallthrough
CT: control target
= control target key end

     0   :  { %8 = vsyncpa [#allocation3], 0  ;;  %s147_s0 = inlined_call_operand.vmem [shape: f32[10,128], index: 0, kind: input, shape index: {}]   ;;  %s148_s1 = inlined_call_operand.vmem [shape: f32[10,2], index: 1, kind: input, shape index: {}]   ;;  %s149_s2 = inlined_call_operand.vmem [shape: f32[2], index: 2, kind: input, shape index: {}]   ;;  %s150_s3 = inlined_call_operand.vmem [shape: f32[2,128], index: 3, kind: output, shape index: {}]  }
   0x1   :  { %s19_s14 = sshll.u32 %s149_s2, 4  ;;  %s20_s14 = int_to_ptr.vmem [resolvable:$true] %s19_s14 }
   0x2   :  { %s92_s15 = scalar_lea.vmem %s20_s14, 16  ;;  %p97_p1 = scmp.lt.s32.totalorder %s20_s14, %s20_s14 }
   0x3   :  { %p93_p0 = scmp.ne.s32.totalorder %s20_s14, %s92_s15  ;;  %p98_p2 = scmp.lt.s32.totalorder %s92_s15, %s92_s15 }
   0x5   :  { %p99_p3 = por %p98_p2, %p97_p1 }
   0x7   :  { %p100_p4 = pnand %p99_p3, %p93_p0 }
   0x9   :  { %103 = shalt.err (!%p100_p4)
}
   0xa   :  { %s106_s16 = smov [#allocation2]  }
   0xb   :  { %22 = dma.vmem_to_smem %s20_s14, 16, %s106_s16, [#allocation3]  }
   0xc   :  { %104 = dma.done.wait [#allocation3], 16  }
   0xd   :  { %105 = vsyncadd [#allocation3], 4294967280 }
   0xe   :  { %26 = sfence }
   0xf   :  { %v30_v0 = vld [vmem:[%s148_s1 + $0x8] sm:$0x3]  ;;  %v29_v1 = vld [vmem:[%s148_s1] sm:$0xff]  ;;  %v107_v2 = vmov 0   ;;  %v108_v3 = vmov 1   ;;  %vm43_vm0 = vcmask 1041408  }
  0x10   :  { %88 = vset.pattern.permute.xlu0 %v107_v2  ;;  %90 = vset.pattern.permute.xlu1 %v107_v2  ;;  %v28_v4 = vld [vmem:[%s147_s0 + $0x8] sm:$0x3]  ;;  %v27_v5 = vld [vmem:[%s147_s0] sm:$0xff]  ;;  %s52_s1 = sld [smem:[#allocation2]]  ;;  %s84_s0 = sld [smem:[#allocation2 + $0x1]]  ;;  %vm76_vm1 = vcmask 1040384  }
  0x11   :  { %38 = vperm.xlu0 %88, %v30_v0   ;;  %33 = vperm.xlu1 %90, %v29_v1  }
  0x15   :  { %89 = vset.pattern.permute.xlu0 %v108_v3  ;;  %91 = vset.pattern.permute.xlu1 %v108_v3 }
  0x16   :  { %60 = vperm.xlu0 %89, %v30_v0   ;;  %56 = vperm.xlu1 %91, %v29_v1   ;;  %v53_v29 = vstv %s52_s1  ;;  %v74_v30 = vstv %s84_s0 }
  0x90   :  { %v39_v6 = vpop.permute.xlu0 %38  ;;  %v34_v7 = vpop.permute.xlu1 %33 }
  0x91   :  { %v42_v8 = vmul.f32 %v39_v6, %v28_v4  ;;  %v41_v9 = vmul.f32 %v34_v7, %v27_v5 }
  0x93   :  { %v44_v10 = vsel %vm43_vm0, %v42_v8, 0.0 }
  0x94   :  { %v45_v11 = vadd.f32 %v44_v10, %v41_v9 }
  0x95   :  { %v61_v12 = vpop.permute.xlu0 %60  ;;  %v57_v13 = vpop.permute.xlu1 %56 }
  0x96   :  { %v46_v14 = vrot.slane %v45_v11, 4  ;;  %v64_v15 = vmul.f32 %v61_v12, %v28_v4  ;;  %v63_v16 = vmul.f32 %v57_v13, %v27_v5 }
  0x98   :  { %v47_v17 = vadd.f32 %v46_v14, %v45_v11  ;;  %v65_v18 = vsel %vm43_vm0, %v64_v15, 0.0 }
  0x99   :  { %v66_v19 = vadd.f32 %v65_v18, %v63_v16 }
  0x9a   :  { %v48_v20 = vrot.slane %v47_v17, 2 }
  0x9b   :  { %v67_v21 = vrot.slane %v66_v19, 4 }
  0x9c   :  { %v49_v22 = vadd.f32 %v48_v20, %v47_v17 }
  0x9d   :  { %v68_v23 = vadd.f32 %v67_v21, %v66_v19 }
  0x9e   :  { %v50_v24 = vrot.slane %v49_v22, 1 }
  0x9f   :  { %v69_v25 = vrot.slane %v68_v23, 2 }
  0xa0   :  { %v51_v27 = vadd.f32 %v50_v24, %v49_v22 }
  0xa1   :  { %v70_v26 = vadd.f32 %v69_v25, %v68_v23 }
  0xa2   :  { %v54_v32 = vadd.f32 %v53_v29, %v51_v27 }
  0xa3   :  { %v71_v28 = vrot.slane %v70_v26, 1 }
  0xa5   :  { %v72_v31 = vadd.f32 %v71_v28, %v70_v26 }
  0xa7   :  { %v75_v33 = vadd.f32 %v74_v30, %v72_v31 }
  0xa9   :  { %v77_v34 = vsel %vm76_vm1, %v54_v32, %v75_v33 }
  0xaa   :  { %78 = vst [vmem:[%s150_s3] sm:$0x3] %v77_v34 }
  0xab   :  { %83 = vsyncpa [#allocation3], 1 }

</bundles_post_ra>
